<compile_context>
chip_gen: v5e
topology: v5e:2x2
jax: 0.10.0
libtpu: 0.0.40
codegen_flags: <defaults>
</compile_context>

<pallas_src>
import functools

import jax
import jax.numpy as jnp
from jax.experimental import pallas as pl
from jax.experimental.pallas import tpu as pltpu

BN_EPS = 1e-5


# --------------------------------------------------------------------------
# Kernel 1: channel pooling (sum -> avg, max) over a lane-dense (N, C, T*S) view.
# --------------------------------------------------------------------------
def _pool_kernel(x_ref, avg_ref, max_ref, *, c_total, tc, masked):
    kc = pl.program_id(1)

    @pl.when(kc == 0)
    def _init():
        avg_ref[...] = jnp.zeros(avg_ref.shape, avg_ref.dtype)
        max_ref[...] = jnp.full(max_ref.shape, -jnp.inf, max_ref.dtype)

    xf = x_ref[...].astype(jnp.float32)                     # (1, TC, T*S)
    if masked:
        # Partial last channel block: out-of-bounds rows hold undefined data,
        # neutralize them (0 for the sum, -inf for the max).
        lim = c_total - kc * tc
        ch = jax.lax.broadcasted_iota(jnp.int32, xf.shape, 1)
        valid = ch < lim
        xs = jnp.where(valid, xf, 0.0)
        xm = jnp.where(valid, xf, -jnp.inf)
    else:
        xs = xf
        xm = xf

    avg_ref[...] = avg_ref[...] + jnp.sum(xs, axis=1, keepdims=True)
    max_ref[...] = jnp.maximum(max_ref[...], jnp.max(xm, axis=1, keepdims=True))

    @pl.when(kc == pl.num_programs(1) - 1)
    def _finalize():
        avg_ref[...] = avg_ref[...] * jnp.float32(1.0 / c_total)


# --------------------------------------------------------------------------
# Kernel 2: tiny MLP (two 1x1 convs, training-mode BatchNorm1d, ReLU, sigmoid).
# --------------------------------------------------------------------------
def _mlp_kernel(avg_ref, max_ref, w1a_ref, w1b_ref, gamma_ref, beta_ref, w2_ref,
                out_ref):
    # Conv1d(2S -> S, k=1, no bias) with the weight pre-split into avg/max halves
    # so no in-kernel concatenation is needed.
    h = (jnp.dot(avg_ref[...], w1a_ref[...], preferred_element_type=jnp.float32)
         + jnp.dot(max_ref[...], w1b_ref[...], preferred_element_type=jnp.float32))

    # BatchNorm1d(S), training mode (fresh nn.Module default): biased batch
    # statistics over all (n, t) rows, affine gamma/beta.
    mu = jnp.mean(h, axis=0, keepdims=True)
    var = jnp.mean((h - mu) * (h - mu), axis=0, keepdims=True)
    hn = (h - mu) * jax.lax.rsqrt(var + BN_EPS)
    hn = hn * gamma_ref[...] + beta_ref[...]
    hr = jnp.maximum(hn, 0.0)                                # ReLU

    # Conv1d(S -> 1, k=1, no bias) expressed so the result is lane-dense (1, NT)
    # instead of a masked (NT, 1) store: contract (1,S) with (NT,S) on S.
    logit = jax.lax.dot_general(w2_ref[...], hr, (((1,), (1,)), ((), ())),
                                preferred_element_type=jnp.float32)
    out_ref[...] = jax.nn.sigmoid(logit).astype(out_ref.dtype)   # (1, NT)


# --------------------------------------------------------------------------
# VMEM accounting helpers (padded, generation-aware).
# --------------------------------------------------------------------------
def _round_up(v, m):
    return ((v + m - 1) // m) * m


def _sublane_multiple(dtype):
    return max(8, 32 // jnp.dtype(dtype).itemsize)   # 8 f32, 16 bf16, 32 int8/fp8


def _padded_tile_bytes(shape, dtype):
    itemsize = jnp.dtype(dtype).itemsize
    dims = list(shape)
    if dims:
        dims[-1] = _round_up(dims[-1], 128)
    if len(dims) >= 2:
        dims[-2] = _round_up(dims[-2], _sublane_multiple(dtype))
    total = 1
    for d in dims:
        total *= d
    return total * itemsize


def _vmem_target_bytes():
    cap = 64 * 1024 * 1024                      # conservative fallback (v7x-sized)
    try:
        info = pltpu.get_tpu_info()
        cap = int(getattr(info, "vmem_capacity_bytes", cap))
    except Exception:
        pass
    # ~25% headroom for compiler-internal scratch: ~48 MiB on v7x, ~96 MiB on v5e/v6e.
    return (cap * 3) // 4


# --------------------------------------------------------------------------
# Wrapper.
# --------------------------------------------------------------------------
def temporal_forward(x, params, *, channel_block=None, expand=True):
    """x: (N, C, T, H, W). Returns attention broadcast to x.shape (expand=True,
    module semantics) or the compact (N, T) attention (expand=False)."""
    n, c, t, h, w = x.shape
    s = h * w
    ts = t * s
    nt = n * t

    # Lane-dense view: fold T into the lane axis (free reshape), keep native dtype.
    x3 = x.reshape(n, c, ts)

    itemsize = jnp.dtype(x.dtype).itemsize
    sub = _sublane_multiple(x.dtype)
    vmem_target = _vmem_target_bytes()

    # Channel-block selection from *padded* sizes against the per-generation budget.
    x_row_bytes = _round_up(ts, 128) * itemsize                 # one channel row
    out_blk_bytes = _padded_tile_bytes((1, 1, ts), jnp.float32)
    resident = 2 * 2 * out_blk_bytes                            # 2 outputs, 2 buffers
    headroom = 2 * 1024 * 1024
    budget = max(2 * sub * x_row_bytes, vmem_target - resident - headroom)
    cap = max(1, budget // (2 * x_row_bytes))                   # x is double-buffered
    if channel_block is not None:
        cap = min(cap, max(1, channel_block))
    if cap >= c:
        tc = c
    else:
        tc = min(c, max(sub, (cap // sub) * sub))               # sublane-aligned block
    kc = pl.cdiv(c, tc)
    masked = (c % tc) != 0

    x_blk_bytes = _padded_tile_bytes((1, tc, ts), x.dtype)
    need_pool = 2 * x_blk_bytes + resident + headroom
    vmem_pool = int(min(vmem_target, max(need_pool, 16 * 1024 * 1024)))

    cost_pool = pl.CostEstimate(
        flops=int(2 * n * c * ts),
        transcendentals=0,
        bytes_accessed=int(n * c * ts * itemsize + 2 * n * ts * 4),
    )

    pool_kernel = functools.partial(_pool_kernel, c_total=c, tc=tc, masked=masked)
    avg_p, max_p = pl.pallas_call(
        pool_kernel,
        out_shape=(jax.ShapeDtypeStruct((n, 1, ts), jnp.float32),
                   jax.ShapeDtypeStruct((n, 1, ts), jnp.float32)),
        grid_spec=pltpu.PrefetchScalarGridSpec(
            num_scalar_prefetch=0,
            grid=(n, kc),
            in_specs=[
                # contiguous (1, TC, T*S) slab per step; channel axis is the reduction
                pl.BlockSpec((1, tc, ts), lambda i, k: (i, k, 0)),
            ],
            out_specs=(
                # constant block index along k -> resident accumulators per n
                pl.BlockSpec((1, 1, ts), lambda i, k: (i, 0, 0)),
                pl.BlockSpec((1, 1, ts), lambda i, k: (i, 0, 0)),
            ),
        ),
        compiler_params=pltpu.CompilerParams(
            dimension_semantics=("parallel", "arbitrary"),
            vmem_limit_bytes=vmem_pool,
        ),
        cost_estimate=cost_pool,
    )(x3)

    # (N, 1, T*S) -> (N*T, S): one free row-major relayout for the tiny MLP.
    avg_rows = avg_p.reshape(nt, s)
    max_rows = max_p.reshape(nt, s)

    # Parameter glue (tiny, pure layout work):
    #   w1 (Conv1d weight squeezed): (S, 2S) -> avg half / max half, transposed.
    w1 = params["w1"].astype(jnp.float32)
    w1a = jnp.transpose(w1[:, :s])                     # (S, S) for the avg rows
    w1b = jnp.transpose(w1[:, s:])                     # (S, S) for the max rows
    gamma2 = params["gamma"].reshape(1, s).astype(jnp.float32)
    beta2 = params["beta"].reshape(1, s).astype(jnp.float32)
    w2r = params["w2"].reshape(1, s).astype(jnp.float32)

    need_mlp = (2 * _padded_tile_bytes((nt, s), jnp.float32)
                + 2 * _padded_tile_bytes((s, s), jnp.float32)
                + 3 * _padded_tile_bytes((1, s), jnp.float32)
                + _padded_tile_bytes((1, nt), jnp.float32))
    vmem_mlp = int(min(vmem_target, max(4 * need_mlp, 16 * 1024 * 1024)))
    cost_mlp = pl.CostEstimate(
        flops=int(2 * nt * s * (2 * s) + 2 * nt * s + 8 * nt * s),
        transcendentals=int(nt),
        bytes_accessed=int(need_mlp),
    )

    att_row = pl.pallas_call(
        _mlp_kernel,
        out_shape=jax.ShapeDtypeStruct((1, nt), jnp.float32),
        # gridless one-shot call: whole arrays in VMEM, params DMA'd exactly once
        in_specs=[pl.BlockSpec(memory_space=pltpu.MemorySpace.VMEM)] * 7,
        out_specs=pl.BlockSpec(memory_space=pltpu.MemorySpace.VMEM),
        compiler_params=pltpu.CompilerParams(vmem_limit_bytes=vmem_mlp),
        cost_estimate=cost_mlp,
    )(avg_rows, max_rows, w1a, w1b, gamma2, beta2, w2r)

    att = att_row.reshape(n, t)
    if not expand:
        return att
    # expand_as (module semantics): broadcast the per-(n, t) scalar over C, H, W.
    # TODO(synk): prefer expand=False (or fuse x * att downstream) — materializing
    # the broadcast writes as many HBM bytes as the whole kernel reads.
    return jnp.broadcast_to(att[:, None, :, None, None], (n, c, t, h, w))


# --------------------------------------------------------------------------
# Pure-JAX reference (mirrors the PyTorch forward, training-mode BN) and params.
# --------------------------------------------------------------------------
def temporal_reference(x, params):
    n, c, t, h, w = x.shape
    s = h * w
    xf = x.astype(jnp.float32)
    x_t = jnp.swapaxes(xf, 1, 2)                          # (N, T, C, H, W)
    x_avg = jnp.mean(x_t, axis=2).reshape(n, t, s)
    x_max = jnp.max(x_t, axis=2).reshape(n, t, s)
    rows = jnp.concatenate([x_avg, x_max], axis=2).reshape(n * t, 2 * s)

    h1 = rows @ params["w1"].T                            # (NT, S)
    mu = jnp.mean(h1, axis=0, keepdims=True)
    var = jnp.mean((h1 - mu) ** 2, axis=0, keepdims=True)
    hn = (h1 - mu) / jnp.sqrt(var + BN_EPS) * params["gamma"] + params["beta"]
    hr = jnp.maximum(hn, 0.0)
    logit = hr @ params["w2"].T                           # (NT, 1)
    att = jax.nn.sigmoid(logit).reshape(n, t)
    return jnp.broadcast_to(att[:, None, :, None, None], x.shape)


def init_params(key, spatial):
    size = spatial * spatial * 2          # Conv1d input channels
    hidden = size // 2                    # == spatial * spatial
    k1, k2 = jax.random.split(key)
    return {
        # Conv1d(size, size//2, 1, bias=False).weight squeezed: (hidden, size)
        "w1": 0.1 * jax.random.normal(k1, (hidden, size), jnp.float32),
        "gamma": jnp.ones((hidden,), jnp.float32),   # BatchNorm1d default weight
        "beta": jnp.zeros((hidden,), jnp.float32),   # BatchNorm1d default bias
        # Conv1d(size//2, 1, 1, bias=False).weight squeezed: (1, hidden)
        "w2": 0.1 * jax.random.normal(k2, (1, hidden), jnp.float32),
    }


if __name__ == "__main__":
    key = jax.random.PRNGKey(0)
    kx, kp = jax.random.split(key)

    # in_tensor: (N, C, T, H, W) with H = W = spatial; Temporal(spatial=4).
    N, C, T, SPATIAL = 2, 24, 16, 4
    H = W = SPATIAL
    x = jax.random.normal(kx, (N, C, T, H, W), jnp.float32)
    params = init_params(kp, SPATIAL)

    # channel_block=16 with C=24 -> 2 channel steps incl. a masked partial block,
    # plus the parallel N axis: exercises init/accumulate/mask/finalize paths.
    out = temporal_forward(x, params, channel_block=16)
    out = jax.block_until_ready(out)

    ref = temporal_reference(x, params)
    assert out.shape == x.shape, (out.shape, x.shape)
    max_err = float(jnp.max(jnp.abs(out - ref)))
    assert jnp.allclose(out, ref, atol=1e-5, rtol=1e-5), max_err

    # Compact path (no broadcast materialization) + single-channel-step path.
    att = temporal_forward(x, params, expand=False)
    att = jax.block_until_ready(att)
    ref_att = ref[:, 0, :, 0, 0]
    assert att.shape == (N, T), att.shape
    assert jnp.allclose(att, ref_att, atol=1e-5, rtol=1e-5)

    print("KERNEL_OK")
</pallas_src>

<mosaic_0001>
module attributes {stable_mosaic.version = 11 : i64} {
  func.func @_pool_kernel(%arg0: i32, %arg1: i32, %arg2: memref<1x16x256xf32, #tpu.memory_space<vmem>>, %arg3: memref<1x1x256xf32, #tpu.memory_space<vmem>>, %arg4: memref<1x1x256xf32, #tpu.memory_space<vmem>>) attributes {dimension_semantics = [#tpu.dimension_semantics<parallel>, #tpu.dimension_semantics<arbitrary>], iteration_bounds = array<i64: 2, 2>, scalar_prefetch = 0 : i64, scratch_operands = 0 : i64, tpu.core_type = #tpu.core_type<tc>, window_params = [{transform_indices = @transform_0, window_bounds = array<i64: 1, 16, 256>}, {transform_indices = @transform_1, window_bounds = array<i64: 1, 1, 256>}, {transform_indices = @transform_2, window_bounds = array<i64: 1, 1, 256>}]} {
    %c0_i32 = arith.constant 0 : i32
    %0 = arith.cmpi eq, %arg1, %c0_i32 : i32
    %1 = arith.extui %0 : i1 to i32
    %c0_i32_0 = arith.constant 0 : i32
    %2 = arith.cmpi ne, %1, %c0_i32_0 : i32
    scf.if %2 {
      %cst_19 = arith.constant 0.000000e+00 : f32
      %26 = vector.broadcast %cst_19 : f32 to vector<1x1x256xf32>
      %c0_20 = arith.constant 0 : index
      %c0_21 = arith.constant 0 : index
      %c0_22 = arith.constant 0 : index
      %27 = vector.load %arg3[%c0_20, %c0_21, %c0_22] : memref<1x1x256xf32, #tpu.memory_space<vmem>>, vector<1x1x256xf32>
      tpu.vector_store %arg3[%c0_20, %c0_21, %c0_22], %26 {strides = array<i32>} : memref<1x1x256xf32, #tpu.memory_space<vmem>>, vector<1x1x256xf32>,
      %cst_23 = arith.constant 0xFF800000 : f32
      %28 = vector.broadcast %cst_23 : f32 to vector<1x1x256xf32>
      %c0_24 = arith.constant 0 : index
      %c0_25 = arith.constant 0 : index
      %c0_26 = arith.constant 0 : index
      %29 = vector.load %arg4[%c0_24, %c0_25, %c0_26] : memref<1x1x256xf32, #tpu.memory_space<vmem>>, vector<1x1x256xf32>
      tpu.vector_store %arg4[%c0_24, %c0_25, %c0_26], %28 {strides = array<i32>} : memref<1x1x256xf32, #tpu.memory_space<vmem>>, vector<1x1x256xf32>,
    } else {
    }
    %c0 = arith.constant 0 : index
    %c0_1 = arith.constant 0 : index
    %c0_2 = arith.constant 0 : index
    %3 = vector.load %arg2[%c0, %c0_1, %c0_2] : memref<1x16x256xf32, #tpu.memory_space<vmem>>, vector<1x16x256xf32>
    %c16_i32 = arith.constant 16 : i32
    %4 = arith.muli %arg1, %c16_i32 : i32
    %c24_i32 = arith.constant 24 : i32
    %5 = arith.subi %c24_i32, %4 : i32
    %6 = tpu.iota {dimensions = array<i32: 1>} : vector<1x16x256xi32>
    %7 = vector.broadcast %5 : i32 to vector<1x16x256xi32>
    %8 = arith.cmpi slt, %6, %7 : vector<1x16x256xi32>
    %cst = arith.constant 0.000000e+00 : f32
    %9 = vector.broadcast %cst : f32 to vector<1x16x256xf32>
    %10 = arith.select %8, %3, %9 : vector<1x16x256xi1>, vector<1x16x256xf32>
    %cst_3 = arith.constant 0xFF800000 : f32
    %11 = vector.broadcast %cst_3 : f32 to vector<1x16x256xf32>
    %12 = arith.select %8, %3, %11 : vector<1x16x256xi1>, vector<1x16x256xf32>
    %c0_4 = arith.constant 0 : index
    %c0_5 = arith.constant 0 : index
    %c0_6 = arith.constant 0 : index
    %13 = vector.load %arg3[%c0_4, %c0_5, %c0_6] : memref<1x1x256xf32, #tpu.memory_space<vmem>>, vector<1x1x256xf32>
    %cst_7 = arith.constant dense<0.000000e+00> : vector<1x256xf32>
    %14 = vector.multi_reduction <add>, %10, %cst_7 [1] : vector<1x16x256xf32> to vector<1x256xf32>
    %15 = vector.shape_cast %14 : vector<1x256xf32> to vector<1x1x256xf32>
    %16 = arith.addf %13, %15 : vector<1x1x256xf32>
    %c0_8 = arith.constant 0 : index
    %c0_9 = arith.constant 0 : index
    %c0_10 = arith.constant 0 : index
    %17 = vector.load %arg3[%c0_8, %c0_9, %c0_10] : memref<1x1x256xf32, #tpu.memory_space<vmem>>, vector<1x1x256xf32>
    tpu.vector_store %arg3[%c0_8, %c0_9, %c0_10], %16 {strides = array<i32>} : memref<1x1x256xf32, #tpu.memory_space<vmem>>, vector<1x1x256xf32>,
    %c0_11 = arith.constant 0 : index
    %c0_12 = arith.constant 0 : index
    %c0_13 = arith.constant 0 : index
    %18 = vector.load %arg4[%c0_11, %c0_12, %c0_13] : memref<1x1x256xf32, #tpu.memory_space<vmem>>, vector<1x1x256xf32>
    %cst_14 = arith.constant dense<0xFF800000> : vector<1x256xf32>
    %19 = vector.multi_reduction <maximumf>, %12, %cst_14 [1] : vector<1x16x256xf32> to vector<1x256xf32>
    %20 = vector.shape_cast %19 : vector<1x256xf32> to vector<1x1x256xf32>
    %21 = arith.maximumf %18, %20 : vector<1x1x256xf32>
    %c0_15 = arith.constant 0 : index
    %c0_16 = arith.constant 0 : index
    %c0_17 = arith.constant 0 : index
    %22 = vector.load %arg4[%c0_15, %c0_16, %c0_17] : memref<1x1x256xf32, #tpu.memory_space<vmem>>, vector<1x1x256xf32>
    tpu.vector_store %arg4[%c0_15, %c0_16, %c0_17], %21 {strides = array<i32>} : memref<1x1x256xf32, #tpu.memory_space<vmem>>, vector<1x1x256xf32>,
    %c1_i32 = arith.constant 1 : i32
    %23 = arith.cmpi eq, %arg1, %c1_i32 : i32
    %24 = arith.extui %23 : i1 to i32
    %c0_i32_18 = arith.constant 0 : i32
    %25 = arith.cmpi ne, %24, %c0_i32_18 : i32
    scf.if %25 {
      %c0_19 = arith.constant 0 : index
      %c0_20 = arith.constant 0 : index
      %c0_21 = arith.constant 0 : index
      %26 = vector.load %arg3[%c0_19, %c0_20, %c0_21] : memref<1x1x256xf32, #tpu.memory_space<vmem>>, vector<1x1x256xf32>
      %cst_22 = arith.constant 0.0416666679 : f32
      %27 = vector.broadcast %cst_22 : f32 to vector<1x1x256xf32>
      %28 = arith.mulf %26, %27 : vector<1x1x256xf32>
      %c0_23 = arith.constant 0 : index
      %c0_24 = arith.constant 0 : index
      %c0_25 = arith.constant 0 : index
      %29 = vector.load %arg3[%c0_23, %c0_24, %c0_25] : memref<1x1x256xf32, #tpu.memory_space<vmem>>, vector<1x1x256xf32>
      tpu.vector_store %arg3[%c0_23, %c0_24, %c0_25], %28 {strides = array<i32>} : memref<1x1x256xf32, #tpu.memory_space<vmem>>, vector<1x1x256xf32>,
    } else {
    }
    return
  }
  func.func @transform_0(%arg0: i32, %arg1: i32) -> (i32, i32, i32) {
    %c0_i32 = arith.constant 0 : i32
    %c0_i32_0 = arith.constant 0 : i32
    return %arg0, %arg1, %c0_i32 : i32, i32, i32
  }
  func.func @transform_1(%arg0: i32, %arg1: i32) -> (i32, i32, i32) {
    %c0_i32 = arith.constant 0 : i32
    %c0_i32_0 = arith.constant 0 : i32
    %c0_i32_1 = arith.constant 0 : i32
    return %arg0, %c0_i32, %c0_i32_0 : i32, i32, i32
  }
  func.func @transform_2(%arg0: i32, %arg1: i32) -> (i32, i32, i32) {
    %c0_i32 = arith.constant 0 : i32
    %c0_i32_0 = arith.constant 0 : i32
    %c0_i32_1 = arith.constant 0 : i32
    return %arg0, %c0_i32, %c0_i32_0 : i32, i32, i32
  }
}

</mosaic_0001>

<bundles_post_ra>
// kernel: tpu_custom_call.1
= control target key start
LH: loop header
LB: loop body
LE: loop exit
PB: predicated region body
PF: predicated region fallthrough
CT: control target
= control target key end

     0   :  { %8 = vsyncpa [#allocation3], 0  ;;  %s1031_s0 = inlined_call_operand.hbm [shape: f32[2,24,256], index: 0, kind: input, shape index: {}]   ;;  %s1032_s1 = inlined_call_operand.hbm [shape: f32[2,1,256], index: 1, kind: output, shape index: {0}]   ;;  %s1033_s2 = inlined_call_operand.hbm [shape: f32[2,1,256], index: 2, kind: output, shape index: {1}]  }
   0x1   :  { %10 = vsyncpa [#allocation3 + $0x1], 0 }
   0x2   :  { %11 = vsyncpa [#allocation4], 0 }
   0x3   :  { %13 = vsyncpa [#allocation4 + $0x1], 0 }
   0x4   :  { %14 = vsyncpa [#allocation7], 0 }
   0x5   :  { %16 = vsyncpa [#allocation7 + $0x1], 0  ;;  %s793_s9 = smov 0   ;;  %s795_s10 = smov 0  }
   0x6   :  { %s797_s11 = smov 0   ;;  %s799_s12 = smov 0  }
   0x7   :  { %s801_s13 = smov 0   ;;  %s803_s14 = smov 0  }
   0x8   :  { %s805_s15 = smov 0   ;;  %s807_s16 = smov 0  }
   0x9   :  { %s809_s17 = smov 0   ;;  %s811_s18 = smov 0  }
   0xa   :  { %s813_s19 = smov 0  }
   0xb LB: > { %1038 = sst [smem:[#allocation11_spill]] %s751_s14  ;;  %s444_s20 = sadd.s32 4294967295, %s771_s19   ;;  %s771_s19 = sphi %s813_s19, %s22_s19   ;;  %s767_s18 = sphi %s811_s18, %s1052_s18   ;;  %s763_s17 = sphi %s809_s17, %s1059_s17   ;;  %s759_s16 = sphi %s807_s16, %s1050_s16   ;;  %s755_s15 = sphi %s805_s15, %s1058_s15   ;;  %s751_s14 = sphi %s803_s14, %s1049_s14   ;;  %s747_s13 = sphi %s801_s13, %s1057_s13   ;;  %s743_s12 = sphi %s799_s12, %s1056_s12   ;;  %s739_s11 = sphi %s797_s11, %s1055_s11   ;;  %s735_s10 = sphi %s795_s10, %s1054_s10   ;;  %s731_s9 = sphi %s793_s9, %s1053_s9  }
   0xc   : > { %1039 = sst [smem:[#allocation12_spill]] %s767_s18  ;;  %s445_s21 = sadd.s32 4294967294, %s771_s19  }
   0xd   : > { %s31_s22 = sadd.s32 1, %s763_s17  ;;  %s34_s23 = sadd.s32 1, %s767_s18 }
   0xe   : > { %p32_p0 = scmp.ge.s32.totalorder %s31_s22, 2  ;;  %s43_s24 = sadd.s32 1, %s751_s14 }
   0xf   : > { %p50_p1 = scmp.ne.s32.totalorder %s751_s14, %s747_s13  ;;  %p51_p2 = scmp.eq.s32.totalorder %s771_s19, 0 }
  0x10   : > { %s1061_s22 = smov (%p32_p0, %s31_s22), 0  ;;  %s1063_s23 = smov (!%p32_p0, %s34_s23), %s767_s18 }
  0x11   : > { %1040 = sst [smem:[#allocation13_spill]] %s1061_s22  ;;  %s39_s25 = ssub.s32 %s763_s17, %s1061_s22 }
  0x12   : > { %p859_p3 = por %p51_p2, %p50_p1  ;;  %p36_p4 = scmp.ge.s32.totalorder %s1063_s23, 2 }
  0x13   : > { %p56_p5 = scmp.ne.s32.totalorder %s747_s13, %s743_s12  ;;  %p57_p6 = scmp.eq.s32.totalorder %s444_s20, 0 }
  0x14   : > { %s69_s27 = sadd.s32 1, %s739_s11  ;;  %s1065_s23 = smov (%p36_p4, %s1063_s23), 0 }
  0x15   : > { %1042 = sst [smem:[#allocation14_spill]] %s1065_s23  ;;  %p867_p7 = por %p57_p6, %p56_p5 }
  0x16   : > { %p79_p8 = scmp.ne.s32.totalorder %s739_s11, %s735_s10  ;;  %s38_s29 = ssub.s32 %s767_s18, %s1065_s23 }
  0x17   : > { %p80_p9 = scmp.eq.s32.totalorder %s444_s20, 3  ;;  %s40_s30 = sor.u32 %s39_s25, %s38_s29 }
  0x18   : > { %p67_p10 = scmp.eq.s32.totalorder %s38_s29, 0  ;;  %p41_p11 = scmp.eq.s32.totalorder %s40_s30, 0 }
  0x19   : > { %p875_p12 = por %p80_p9, %p79_p8  ;;  %p85_p13 = scmp.ne.s32.totalorder %s735_s10, %s731_s9 }
  0x1a   : > { %s880_s4 = scalar_select %p67_p10, %s739_s11, %s69_s27  }
  0x1b   : > { %s883_s5 = scalar_select %p41_p11, %s751_s14, %s43_s24  }
  0x1c   : > { %p86_p0 = scmp.eq.s32.totalorder %s445_s21, 3  ;;  %p447_p2 = scmp.ge.s32.totalorder %s771_s19, 4 }
  0x1d   : > { %1045 = sst [smem:[#allocation15_spill]] %s883_s5 }
  0x1e   : > { %p887_p1 = por %p86_p0, %p85_p13  ;;  %128 = sbr.rel (%p447_p2) target bundleno = 74 (0x4a), region = 16 }
  0x23   : > { %131 = sbr.rel (!%p859_p3) target bundleno = 74 (0x4a), region = 20  ;;  %s132_s7 = sand.u32 (%p859_p3), 1, %s751_s14  }
  0x24   : > { %s449_s8 = sshll.u32 (%p859_p3), %s763_s17, 1  ;;  %s448_s12 = sshll.u32 (%p859_p3), %s132_s7, 5 }
  0x25   : > { %s138_s20 = ssub.s32 (%p859_p3), 3, %s449_s8  ;;  %s899_s27 = scalar_lea.sflag (%p859_p3), [#allocation3], %s132_s7 }
  0x26   : > { %p139_p4 = scmp.lt.s32.totalorder (%p859_p3), %s138_s20, 2  ;;  %s136_s29 = scalar_lea.vmem (%p859_p3), [#allocation2], %s448_s12 }
  0x28   : > { %s1067_s20 = smov (!%p139_p4, %s138_s20), 2 }
  0x29   : > { %s470_s21 = sshll.u32 %s1067_s20, 4 }
  0x2a   : > { %s143_s24 = ssub.s32 32, %s470_s21 }
  0x2b   : > { %s144_s25 = sshll.u32 %s143_s24, 4 }
  0x2c   : > { %145 = vsyncadd %s899_s27, %s144_s25  ;;  %s471_s26 = sshll.u32 %s763_s17, 2  ;;  %s472_s30 = smul.u32 6, %s767_s18 }
  0x2d   : > { %s904_s23 = sshll.u32 %s136_s29, 4  ;;  %p906_p3 = scmp.ne.s32.totalorder %s470_s21, 0  ;;  %s156_s23 = int_to_ptr.vmem [resolvable:$true] %s904_s23 }
  0x2e   : > { %s149_s7 = sadd.s32 %s472_s30, %s471_s26  ;;  %s456_s24 = sshll.u32 %s1067_s20, 8 }
  0x2f   : > { %s454_s22 = sshll.u32 %s149_s7, 3  ;;  %s580_s21 = sshrl.u32 %s456_s24, 4 }
  0x30   : > { %s151_s5 = scalar_lea.hbm %s1031_s0, %s454_s22  ;;  %s589_s7 = scalar_lea.hbm %s1031_s0, 96 }
  0x31   : > { %s153_s14 = sshll.u32 %s151_s5, 4  ;;  %s915_s14 = int_to_ptr.hbm [resolvable:$true] %s153_s14 }
  0x32   : > { %s578_s29 = sshra.s32 %s915_s14, 4  ;;  %s579_s29 = int_to_ptr.hbm [resolvable:$true] %s578_s29 }
  0x33   : > { %s585_s18 = scalar_lea.hbm %s579_s29, %s580_s21 }
  0x34   : > { %p586_p5 = scmp.ne.s32.totalorder %s579_s29, %s585_s18  ;;  %p591_p9 = scmp.lt.s32.totalorder %s589_s7, %s585_s18 }
  0x36   : > { %p587_p6 = pnand %p586_p5, %p906_p3 }
  0x38   : > { %p588_p8 = pneg %p587_p6 }
  0x3a   : > { %p593_p10 = pnand %p591_p9, %p588_p8 }
  0x3c   : > { %596 = shalt.err (!%p593_p10)
}
  0x3d   : > { %s597_s22 = sshra.s32 %s156_s23, 4  ;;  %s773_s12 = smov [#allocation2]   ;;  %s598_s22 = int_to_ptr.vmem [resolvable:$true] %s597_s22 }
  0x3e   : > { %s604_s5 = scalar_lea.vmem %s598_s22, %s580_s21  ;;  %s608_s25 = scalar_lea.vmem %s773_s12, 64 }
  0x3f   : > { %p605_p11 = scmp.ne.s32.totalorder %s598_s22, %s604_s5  ;;  %p610_p2 = scmp.lt.s32.totalorder %s608_s25, %s604_s5 }
  0x41   : > { %p606_p13 = pnand %p605_p11, %p906_p3 }
  0x43   : > { %p607_p0 = pneg %p606_p13 }
  0x45   : > { %p612_p4 = pnand %p610_p2, %p607_p0 }
  0x47   : > { %615 = shalt.err (!%p612_p4)
}
  0x48   : > { %s774_s29 = smov 256   ;;  %s775_s18 = smov 16  }
  0x49   : > { %161 = dma.hbm_to_vmem [thread:$0]  (%p906_p3), %s915_s14, %s456_s24, %s156_s23, %s899_s27, %s774_s29, %s774_s29, %s775_s18  }
  0x4a PF: > { %p457_p5 = scmp.ge.s32.totalorder %s771_s19, 1  ;;  %p163_p6 = scmp.lt.s32.totalorder %s771_s19, 5 }
  0x4c   : > { %p164_p8 = pnand %p457_p5, %p163_p6 }
  0x4d   : > { %s169_s21 = sand.u32 (!%p164_p8), 1, %s747_s13  }
  0x4e   : > { %167 = sbr.rel (%p164_p8) target bundleno = 164 (0xa4), region = 24  ;;  %s458_s26 = sshll.u32 (!%p164_p8), %s169_s21, 5 }
  0x4f   : > { %s170_s30 = scalar_lea.sflag (!%p164_p8), [#allocation3], %s169_s21  ;;  %s173_s7 = scalar_lea.vmem (!%p164_p8), [#allocation2], %s458_s26 }
  0x53   : > { %718 = dma.done.wait (%p867_p7), %s170_s30, 512  }
  0x54   : > { %720 = vsyncadd (%p867_p7), %s170_s30, 4294966784  ;;  %s945_s14 = sand.u32 1, %s735_s10   ;;  %p461_p3 = scmp.ne.s32.totalorder %s755_s15, 0 }
  0x55   : > { %s459_s23 = sshll.u32 %s945_s14, 1 }
  0x56   : > { %s948_s20 = scalar_lea.vmem [#allocation5], %s459_s23  ;;  %s950_s27 = scalar_lea.vmem [#allocation6], %s459_s23 }
  0x57   : > { %209 = sbr.rel (%p461_p3) target bundleno = 97 (0x61), region = 32 }
  0x5c   : > { %v210_v0 = vlaneseq  ;;  %v776_v1 = vmov 0.0   ;;  %v777_v2 = vmov -inf  }
  0x5e   : > { %vm212_vm0 = vcmp.lt.s32.totalorder %v210_v0, 256 }
  0x5f   : > { %214 = vst.msk [vmem:[%s948_s20] sm:$0x3] %vm212_vm0, %v776_v1 }
  0x60   : > { %215 = vst.msk [vmem:[%s950_s27] sm:$0x3] %vm212_vm0, %v777_v2 }
  0x61 PF: > { %s462_s28 = sshll.u32 %s755_s15, 4  ;;  %v222_v3 = vlaneseq  ;;  %v216_v4 = vld [vmem:[%s173_s7] sm:$0xff]  ;;  %v217_v5 = vld [vmem:[%s173_s7 + $0x8] sm:$0xff]  ;;  %v218_v8 = vld [vmem:[%s173_s7 + $0x10] sm:$0xff]  ;;  %vm254_vm3 = vcmask 1040384   ;;  %p463_p7 = scmp.ne.s32.totalorder %s755_s15, 1 }
  0x62   : > { %s221_s8 = ssub.s32 24, %s462_s28  ;;  %v219_v9 = vld [vmem:[%s173_s7 + $0x18] sm:$0xff] }
  0x63   : > { %v223_v6 = vshrl.u32 %v222_v3, 7  ;;  %v225_v7 = vstv %s221_s8  ;;  %vm260_vm4 = vcmp.lt.s32.totalorder %v222_v3, 256 }
  0x65   : > { %v224_v10 = vadd.s32 8, %v223_v6  ;;  %vm226_vm1 = vcmp.lt.s32.totalorder %v223_v6, %v225_v7 }
  0x66   : > { %v228_v11 = vsel %vm226_vm1, %v216_v4, 0.0  ;;  %v229_v12 = vsel %vm226_vm1, %v217_v5, 0.0  ;;  %v232_v13 = vsel %vm226_vm1, %v216_v4, -inf  ;;  %v233_v14 = vsel %vm226_vm1, %v217_v5, -inf  ;;  %v236_v47 = vld [vmem:[%s948_s20] sm:$0x3] }
  0x67   : > { %vm227_vm2 = vcmp.lt.s32.totalorder %v224_v10, %v225_v7  ;;  %v263_v49 = vld [vmem:[%s950_s27] sm:$0x3] }
  0x68   : > { %v230_v15 = vsel %vm227_vm2, %v218_v8, 0.0  ;;  %v231_v16 = vsel %vm227_vm2, %v219_v9, 0.0  ;;  %v234_v17 = vsel %vm227_vm2, %v218_v8, -inf  ;;  %v235_v18 = vsel %vm227_vm2, %v219_v9, -inf }
  0x69   : > { %v237_v19 = vadd.f32 %v230_v15, %v228_v11  ;;  %v244_v20 = vadd.f32 %v231_v16, %v229_v12  ;;  %v264_v21 = vmax.f32 %v232_v13, %v234_v17  ;;  %v271_v22 = vmax.f32 %v233_v14, %v235_v18 }
  0x6b   : > { %v238_v23 = vrot.slane %v237_v19, 4  ;;  %v245_v24 = vrot.slane %v244_v20, 4  ;;  %v265_v25 = vrot.slane %v264_v21, 4  ;;  %v272_v26 = vrot.slane %v271_v22, 4 }
  0x6d   : > { %v239_v27 = vadd.f32 %v238_v23, %v237_v19  ;;  %v246_v28 = vadd.f32 %v245_v24, %v244_v20  ;;  %v266_v29 = vmax.f32 %v264_v21, %v265_v25  ;;  %v273_v30 = vmax.f32 %v271_v22, %v272_v26 }
  0x6f   : > { %v240_v31 = vrot.slane %v239_v27, 2  ;;  %v247_v32 = vrot.slane %v246_v28, 2  ;;  %v267_v33 = vrot.slane %v266_v29, 2  ;;  %v274_v34 = vrot.slane %v273_v30, 2 }
  0x71   : > { %v241_v35 = vadd.f32 %v240_v31, %v239_v27  ;;  %v248_v36 = vadd.f32 %v247_v32, %v246_v28  ;;  %v268_v37 = vmax.f32 %v266_v29, %v267_v33  ;;  %v275_v38 = vmax.f32 %v273_v30, %v274_v34 }
  0x73   : > { %v242_v39 = vrot.slane %v241_v35, 1  ;;  %v249_v40 = vrot.slane %v248_v36, 1  ;;  %v269_v41 = vrot.slane %v268_v37, 1  ;;  %v276_v42 = vrot.slane %v275_v38, 1 }
  0x75   : > { %v243_v43 = vadd.f32 %v242_v39, %v241_v35  ;;  %v250_v44 = vadd.f32 %v249_v40, %v248_v36  ;;  %v270_v45 = vmax.f32 %v268_v37, %v269_v41  ;;  %v277_v46 = vmax.f32 %v275_v38, %v276_v42 }
  0x77   : > { %v253_v48 = vrot.slane %v250_v44, 7  ;;  %v280_v50 = vrot.slane %v277_v46, 7 }
  0x79   : > { %v255_v51 = vsel %vm254_vm3, %v243_v43, %v253_v48  ;;  %v281_v52 = vsel %vm254_vm3, %v270_v45, %v280_v50  ;;  %288 = sbr.rel (%p463_p7) target bundleno = 135 (0x87), region = 36 }
  0x7a   : > { %v257_v53 = vadd.f32 %v255_v51, %v236_v47  ;;  %v283_v54 = vmax.f32 %v263_v49, %v281_v52 }
  0x7c   : > { %262 = vst.msk [vmem:[%s948_s20] sm:$0x3] %vm260_vm4, %v257_v53 }
  0x7d   : > { %284 = vst.msk [vmem:[%s950_s27] sm:$0x3] %vm260_vm4, %v283_v54 }
  0x83   : > { %v289_v55 = vld [vmem:[%s948_s20] sm:$0x3] }
  0x84   : > { %v290_v56 = vmul.f32 0.041666668, %v289_v55 }
  0x86   : > { %291 = vst.msk [vmem:[%s948_s20] sm:$0x3] %vm260_vm4, %v290_v56 }
  0x87 PF: > { %s466_s24 = sshll.u32 %s759_s16, 1  ;;  %s310_s25 = sshll.u32 %s948_s20, 4  ;;  %s311_s25 = int_to_ptr.vmem [resolvable:$true] %s310_s25 }
  0x88   : > { %s308_s12 = scalar_lea.hbm %s1032_s1, %s466_s24  ;;  %s293_s15 = scalar_lea.sflag [#allocation4], %s945_s14 }
  0x89   : > { %s312_s29 = sshll.u32 %s308_s12, 4  ;;  %s637_s16 = scalar_lea.hbm %s1032_s1, 4  ;;  %s313_s29 = int_to_ptr.hbm [resolvable:$true] %s312_s29 }
  0x8a   : > { %s631_s18 = sshra.s32 %s313_s29, 4  ;;  %s632_s18 = int_to_ptr.hbm [resolvable:$true] %s631_s18 }
  0x8b   : > { %s633_s21 = scalar_lea.hbm %s632_s18, 2  ;;  %p638_p13 = scmp.lt.s32.totalorder %s632_s18, %s1032_s1 }
  0x8c   : > { %p634_p9 = scmp.ne.s32.totalorder %s632_s18, %s633_s21  ;;  %p639_p0 = scmp.lt.s32.totalorder %s637_s16, %s633_s21 }
  0x8e   : > { %p635_p10 = pnand %p634_p9, %p875_p12  ;;  %p640_p2 = por %p639_p0, %p638_p13 }
  0x90   : > { %p636_p11 = pneg %p635_p10 }
  0x92   : > { %p641_p4 = pnand %p640_p2, %p636_p11 }
  0x94   : > { %644 = shalt.err (!%p641_p4)
}
  0x95   : > { %474 = dma.vmem_to_hbm [thread:$0]  (%p875_p12), %s311_s25, 32, %s313_s29, %s293_s15  }
  0x96   : > { %s322_s8 = scalar_lea.hbm %s1033_s2, %s466_s24  ;;  %s324_s22 = sshll.u32 %s950_s27, 4  ;;  %s325_s22 = int_to_ptr.vmem [resolvable:$true] %s324_s22 }
  0x97   : > { %s326_s5 = sshll.u32 %s322_s8, 4  ;;  %s298_s12 = scalar_lea.sflag [#allocation7], %s945_s14  ;;  %s327_s5 = int_to_ptr.hbm [resolvable:$true] %s326_s5 }
  0x98   : > { %s659_s18 = sshra.s32 %s327_s5, 4  ;;  %s665_s25 = scalar_lea.hbm %s1033_s2, 4  ;;  %s660_s18 = int_to_ptr.hbm [resolvable:$true] %s659_s18 }
  0x99   : > { %s661_s21 = scalar_lea.hbm %s660_s18, 2  ;;  %p666_p3 = scmp.lt.s32.totalorder %s660_s18, %s1033_s2 }
  0x9a   : > { %p662_p5 = scmp.ne.s32.totalorder %s660_s18, %s661_s21  ;;  %p667_p7 = scmp.lt.s32.totalorder %s665_s25, %s661_s21 }
  0x9c   : > { %p663_p6 = pnand %p662_p5, %p875_p12  ;;  %p668_p9 = por %p667_p7, %p666_p3 }
  0x9e   : > { %p664_p8 = pneg %p663_p6 }
  0xa0   : > { %p669_p10 = pnand %p668_p9, %p664_p8 }
  0xa2   : > { %672 = shalt.err (!%p669_p10)
}
  0xa3   : > { %475 = dma.vmem_to_hbm [thread:$0]  (%p875_p12), %s325_s22, 32, %s327_s5, %s298_s12  }
  0xa4 PF: > { %p485_p11 = scmp.ge.s32.totalorder %s771_s19, 2  ;;  %s338_s14 = sand.u32 1, %s731_s9  }
  0xa5   : > { %s339_s27 = scalar_lea.sflag [#allocation4], %s338_s14 }
  0xa6   : > { %p479_p13 = pnand %p485_p11, %p887_p1 }
  0xa8   : > { %p480_p0 = pneg %p479_p13 }
  0xaa   : > { %722 = dma.done.wait (%p480_p0), %s339_s27, 32  }
  0xab   : > { %724 = vsyncadd (%p480_p0), %s339_s27, 4294967264  ;;  %s349_s24 = scalar_lea.sflag [#allocation7], %s338_s14 }
  0xac   : > { %726 = dma.done.wait (%p480_p0), %s349_s24, 32  }
  0xad   : > { %728 = vsyncadd (%p480_p0), %s349_s24, 4294967264  ;;  %s22_s19 = sadd.s32 1, %s771_s19   ;;  %s1048_s3 = sld [smem:[#allocation11_spill]] }
  0xae   : > { %p19_p2 = scmp.ge.s32.totalorder %s22_s19, 6   ;;  %s1049_s14 = sld [smem:[#allocation15_spill]] }
  0xaf   : > { %s1050_s16 = sld [smem:[#allocation12_spill]]  ;;  %s1053_s9 = smov %s735_s10 }
  0xb0   : > { %s1051_s6 = sld [smem:[#allocation13_spill]]  ;;  %s1054_s10 = smov %s739_s11 }
  0xb1   : > { %s1052_s18 = sld [smem:[#allocation14_spill]]  ;;  %s1055_s11 = smov %s880_s4 }
  0xb2   : > { %s1056_s12 = smov %s747_s13  ;;  %s1058_s15 = smov %s763_s17 }
  0xb3   : > { %s1057_s13 = smov %s1048_s3  ;;  %21 = sbr.rel (!%p19_p2) target bundleno = 11 (0xb), region = 94 }
  0xb6   : > { %s1059_s17 = smov %s1051_s6 }
  0xb8   :  { %355 = vsyncpa [#allocation3], 1 }
  0xb9   :  { %357 = vsyncpa [#allocation3 + $0x1], 1 }
  0xba   :  { %358 = vsyncpa [#allocation4], 1 }
  0xbb   :  { %360 = vsyncpa [#allocation4 + $0x1], 1 }
  0xbc   :  { %361 = vsyncpa [#allocation7], 1 }
  0xbd   :  { %363 = vsyncpa [#allocation7 + $0x1], 1 }

</bundles_post_ra>
